<compile_context>
chip_gen: v5e
topology: v5e:2x2
jax: 0.10.0
libtpu: 0.0.40
codegen_flags: <defaults>
</compile_context>

<pallas_src>
import functools

import jax
import jax.numpy as jnp
from jax.experimental import pallas as pl
from jax.experimental.pallas import tpu as pltpu


def _pick_tile(n, candidates):
    """Largest candidate that divides n, else n (single block)."""
    for c in candidates:
        if c <= n and n % c == 0:
            return c
    return n


# ---------------------------------------------------------------------------
# Input projection kernel:  gi = x @ W_ih^T   as one large tiled matmul.
#   x_2d: (N, D),  w: (D, 3D)  ->  (N, 3D)
# ---------------------------------------------------------------------------
def input_proj_kernel(x_ref, w_ref, o_ref):
    o_ref[...] = jnp.dot(x_ref[...], w_ref[...],
                         preferred_element_type=jnp.float32)


def input_proj(x_2d, w):
    N, D = x_2d.shape
    E = w.shape[1]
    TR = _pick_tile(N, (512, 256, 128, 64, 32, 16, 8))
    return pl.pallas_call(
        input_proj_kernel,
        out_shape=jax.ShapeDtypeStruct((N, E), jnp.float32),
        grid_spec=pltpu.PrefetchScalarGridSpec(
            num_scalar_prefetch=0,
            grid=(N // TR,),
            in_specs=[
                pl.BlockSpec((TR, D), lambda i: (i, 0)),   # x rows
                pl.BlockSpec((D, E), lambda i: (0, 0)),    # W_ih^T (resident)
            ],
            out_specs=pl.BlockSpec((TR, E), lambda i: (i, 0)),
        ),
        compiler_params=pltpu.CompilerParams(
            dimension_semantics=("parallel",)),
    )(x_2d, w)


# ---------------------------------------------------------------------------
# GRU recurrence kernel (one layer).
#   Grid = (B // TB, T // TT); time axis is sequential ("arbitrary"), batch
#   axis is "parallel" (megacore on v7x). Hidden state carried in VMEM scratch.
#   Each grid step consumes a (TT, TB, 3D) block of precomputed input
#   projections and runs TT unrolled recurrence steps, each issuing a single
#   fused (TB, D) x (D, 3D) MXU matmul for the hidden gates.
#   If apply_ln, LayerNorm(gamma, beta) is fused into the output store.
# ---------------------------------------------------------------------------
def gru_layer_block_kernel(gi_ref, whh_ref, h0_ref, g_ref, b_ref, out_ref,
                           h_scratch, *, tt, d, apply_ln):
    @pl.when(pl.program_id(1) == 0)
    def _():
        h_scratch[...] = h0_ref[...]

    whh = whh_ref[...]            # (D, 3D), resident across the grid
    if apply_ln:
        gamma = g_ref[...]        # (1, D)
        beta = b_ref[...]         # (1, D)

    def step(i, carry):
        h = h_scratch[...]                                   # (TB, D) f32
        gi = gi_ref[i]                                       # (TB, 3D)
        gh = jnp.dot(h, whh, preferred_element_type=jnp.float32)   # (TB, 3D)
        # PyTorch gate order (r, z, n); n uses r * (h @ W_hn^T).
        r = jax.nn.sigmoid(gi[:, :d] + gh[:, :d])
        z = jax.nn.sigmoid(gi[:, d:2 * d] + gh[:, d:2 * d])
        n = jnp.tanh(gi[:, 2 * d:] + r * gh[:, 2 * d:])
        h_new = (1.0 - z) * n + z * h
        h_scratch[...] = h_new
        if apply_ln:
            mu = jnp.mean(h_new, axis=-1, keepdims=True)
            xc = h_new - mu
            var = jnp.mean(xc * xc, axis=-1, keepdims=True)
            y = xc * jax.lax.rsqrt(var + 1e-5) * gamma + beta
            out_ref[i] = y.astype(out_ref.dtype)
        else:
            out_ref[i] = h_new.astype(out_ref.dtype)
        return carry

    jax.lax.fori_loop(0, tt, step, 0, unroll=True)


def gru_layer(gi_tbe, whh, h0_bd, ln_g, ln_b, *, apply_ln, d_model):
    """gi_tbe: (T, B, 3D) precomputed input projections
       whh:    (D, 3D) transposed hidden weights
       h0_bd:  (B, D) initial hidden state
       ln_g/ln_b: (1, D) LayerNorm params (used only when apply_ln=True)"""
    T, B, E = gi_tbe.shape
    D = d_model
    TT = _pick_tile(T, (32, 16, 8, 4, 2))
    TB = _pick_tile(B, (64, 32, 16, 8)) if B % 8 == 0 else B

    kernel = functools.partial(gru_layer_block_kernel,
                               tt=TT, d=D, apply_ln=apply_ln)
    return pl.pallas_call(
        kernel,
        out_shape=jax.ShapeDtypeStruct((T, B, D), jnp.float32),
        grid_spec=pltpu.PrefetchScalarGridSpec(
            num_scalar_prefetch=0,
            grid=(B // TB, T // TT),
            in_specs=[
                pl.BlockSpec((TT, TB, E), lambda b, t: (t, b, 0)),  # gi block
                pl.BlockSpec((D, E), lambda b, t: (0, 0)),          # W_hh^T resident
                pl.BlockSpec((TB, D), lambda b, t: (b, 0)),         # h0
                pl.BlockSpec((1, D), lambda b, t: (0, 0)),          # ln gamma
                pl.BlockSpec((1, D), lambda b, t: (0, 0)),          # ln beta
            ],
            out_specs=pl.BlockSpec((TT, TB, D), lambda b, t: (t, b, 0)),
            scratch_shapes=[pltpu.VMEM((TB, D), jnp.float32)],      # carried h
        ),
        compiler_params=pltpu.CompilerParams(
            dimension_semantics=("parallel", "arbitrary")),
    )(gi_tbe, whh, h0_bd, ln_g, ln_b)


# ---------------------------------------------------------------------------
# RNNMixer forward (glue in plain JAX, hot path in the Pallas kernels above).
# ---------------------------------------------------------------------------
def rnn_mixer_forward(x_btd, params):
    B, T, D = x_btd.shape
    depth = len(params["wih"])
    h = jnp.transpose(x_btd, (1, 0, 2)).astype(jnp.float32)  # (T, B, D) time-major
    for layer in range(depth):
        wih = params["wih"][layer]                            # (D, 3D)
        whh = params["whh"][layer]                            # (D, 3D)
        h0 = jnp.broadcast_to(params["h0"][layer], (B, D))    # expand(-1, B, -1)
        # Hoisted input projection: one big batched matmul over all T*B rows.
        gi = input_proj(h.reshape(T * B, D), wih).reshape(T, B, 3 * D)
        is_last = layer == depth - 1
        h = gru_layer(gi, whh, h0, params["ln_gamma"], params["ln_beta"],
                      apply_ln=is_last, d_model=D)
        # inter-layer dropout: identity in eval mode
    return jnp.transpose(h, (1, 0, 2))                         # back to (B, T, D)


# ---------------------------------------------------------------------------
# Pure-JAX reference (for correctness check).
# ---------------------------------------------------------------------------
def rnn_mixer_reference(x_btd, params):
    B, T, D = x_btd.shape
    depth = len(params["wih"])
    h_seq = x_btd.astype(jnp.float32)
    for layer in range(depth):
        wih, whh = params["wih"][layer], params["whh"][layer]  # (D, 3D)
        h = jnp.broadcast_to(params["h0"][layer], (B, D))
        outs = []
        for t in range(T):
            x_t = h_seq[:, t, :]
            gi = x_t @ wih
            gh = h @ whh
            r = jax.nn.sigmoid(gi[:, :D] + gh[:, :D])
            z = jax.nn.sigmoid(gi[:, D:2 * D] + gh[:, D:2 * D])
            n = jnp.tanh(gi[:, 2 * D:] + r * gh[:, 2 * D:])
            h = (1.0 - z) * n + z * h
            outs.append(h)
        h_seq = jnp.stack(outs, axis=1)
    mu = jnp.mean(h_seq, axis=-1, keepdims=True)
    var = jnp.mean((h_seq - mu) ** 2, axis=-1, keepdims=True)
    y = (h_seq - mu) * jax.lax.rsqrt(var + 1e-5)
    return y * params["ln_gamma"][0] + params["ln_beta"][0]


# ---------------------------------------------------------------------------
# Deterministic parameter construction (shapes from the PyTorch module).
# ---------------------------------------------------------------------------
def make_params(key, d_model, depth):
    bound = 1.0 / float(d_model) ** 0.5
    wih, whh = [], []
    for _ in range(depth):
        key, k1, k2 = jax.random.split(key, 3)
        # PyTorch weight_ih_l{k}: (3*D, D) with gate order (r, z, n).
        # Store transposed (D, 3D) so the kernels compute x @ W^T with a
        # single fused matmul per operand.
        w_ih = jax.random.uniform(k1, (3 * d_model, d_model), jnp.float32,
                                  -bound, bound)
        w_hh = jax.random.uniform(k2, (3 * d_model, d_model), jnp.float32,
                                  -bound, bound)
        wih.append(jnp.transpose(w_ih))
        whh.append(jnp.transpose(w_hh))
    key, kh = jax.random.split(key)
    h0 = jax.random.normal(kh, (depth, 1, d_model), jnp.float32)  # nn.Parameter randn
    return {
        "wih": wih,
        "whh": whh,
        "h0": h0,
        "ln_gamma": jnp.ones((1, d_model), jnp.float32),   # LayerNorm default init
        "ln_beta": jnp.zeros((1, d_model), jnp.float32),
    }


if __name__ == "__main__":
    B, T, D, depth = 2, 8, 32, 2

    key = jax.random.PRNGKey(0)
    key, kx = jax.random.split(key)
    x = jax.random.normal(kx, (B, T, D), jnp.float32)
    params = make_params(key, D, depth)

    out = rnn_mixer_forward(x, params)
    out = jax.block_until_ready(out)

    ref = rnn_mixer_reference(x, params)
    assert out.shape == (B, T, D)
    assert jnp.allclose(out, ref, atol=2e-4, rtol=2e-4), (
        f"max abs err = {jnp.max(jnp.abs(out - ref))}")

    print("KERNEL_OK")
</pallas_src>

<mosaic_0001>
module attributes {stable_mosaic.version = 11 : i64} {
  func.func @input_proj_kernel(%arg0: i32, %arg1: memref<16x32xf32, #tpu.memory_space<vmem>>, %arg2: memref<32x96xf32, #tpu.memory_space<vmem>>, %arg3: memref<16x96xf32, #tpu.memory_space<vmem>>) attributes {dimension_semantics = [#tpu.dimension_semantics<parallel>], iteration_bounds = array<i64: 1>, scalar_prefetch = 0 : i64, scratch_operands = 0 : i64, tpu.core_type = #tpu.core_type<tc>, window_params = [{transform_indices = @transform_0, window_bounds = array<i64: 16, 32>}, {pipeline_mode = #tpu.pipeline_mode<synchronous>, transform_indices = @transform_1, window_bounds = array<i64: 32, 96>}, {transform_indices = @transform_2, window_bounds = array<i64: 16, 96>}]} {
    %c0 = arith.constant 0 : index
    %c0_0 = arith.constant 0 : index
    %0 = vector.load %arg1[%c0, %c0_0] : memref<16x32xf32, #tpu.memory_space<vmem>>, vector<16x32xf32>
    %c0_1 = arith.constant 0 : index
    %c0_2 = arith.constant 0 : index
    %1 = vector.load %arg2[%c0_1, %c0_2] : memref<32x96xf32, #tpu.memory_space<vmem>>, vector<32x96xf32>
    %cst = arith.constant dense<0.000000e+00> : vector<16x96xf32>
    %2 = tpu.matmul %0, %1, %cst {dimension_numbers = #tpu.dot_dimension_numbers<[1], [0], [0], [1], [0, 0, 1, 1], [], []>} : vector<16x32xf32>, vector<32x96xf32>, vector<16x96xf32> -> vector<16x96xf32>
    %c0_3 = arith.constant 0 : index
    %c0_4 = arith.constant 0 : index
    %3 = vector.load %arg3[%c0_3, %c0_4] : memref<16x96xf32, #tpu.memory_space<vmem>>, vector<16x96xf32>
    tpu.vector_store %arg3[%c0_3, %c0_4], %2 {strides = array<i32>} : memref<16x96xf32, #tpu.memory_space<vmem>>, vector<16x96xf32>,
    return
  }
  func.func @transform_0(%arg0: i32) -> (i32, i32) {
    %c0_i32 = arith.constant 0 : i32
    %c0_i32_0 = arith.constant 0 : i32
    return %arg0, %c0_i32 : i32, i32
  }
  func.func @transform_1(%arg0: i32) -> (i32, i32) {
    %c0_i32 = arith.constant 0 : i32
    %c0_i32_0 = arith.constant 0 : i32
    %c0_i32_1 = arith.constant 0 : i32
    return %c0_i32, %c0_i32_0 : i32, i32
  }
  func.func @transform_2(%arg0: i32) -> (i32, i32) {
    %c0_i32 = arith.constant 0 : i32
    %c0_i32_0 = arith.constant 0 : i32
    return %arg0, %c0_i32 : i32, i32
  }
}

</mosaic_0001>

<bundles_post_ra>
// kernel: tpu_custom_call.1
= control target key start
LH: loop header
LB: loop body
LE: loop exit
PB: predicated region body
PF: predicated region fallthrough
CT: control target
= control target key end

     0   :  { %7 = vsyncpa [#allocation3], 0  ;;  %s230_s0 = inlined_call_operand.hbm [shape: f32[16,32], index: 0, kind: input, shape index: {}]   ;;  %s231_s1 = inlined_call_operand.hbm [shape: f32[32,96], index: 1, kind: input, shape index: {}]   ;;  %s232_s2 = inlined_call_operand.hbm [shape: f32[16,96], index: 2, kind: output, shape index: {}]  }
   0x1   :  { %8 = vsyncpa [#allocation6], 0 }
   0x2   :  { %9 = vsyncpa [#allocation4], 0  ;;  %s14_s11 = sshll.u32 %s230_s0, 4  ;;  %s192_s12 = smov [#allocation2]   ;;  %s15_s11 = int_to_ptr.hbm [resolvable:$true] %s14_s11 }
   0x3   :  { %s16_s13 = sshll.u32 %s192_s12, 4  ;;  %s27_s16 = sshll.u32 %s231_s1, 4  ;;  %s17_s13 = int_to_ptr.vmem [resolvable:$true] %s16_s13  ;;  %s28_s16 = int_to_ptr.hbm [resolvable:$true] %s27_s16 }
   0x4   :  { %s193_s17 = smov 128   ;;  %s194_s18 = smov 8  }
   0x5   :  { %22 = dma.hbm_to_vmem [thread:$0]  %s15_s11, 256, %s17_s13, [#allocation3], %s193_s17, %s193_s17, %s194_s18  }
   0x6   :  { %s195_s19 = smov [#allocation5]  }
   0x7   :  { %s29_s20 = sshll.u32 %s195_s19, 4  ;;  %s30_s20 = int_to_ptr.vmem [resolvable:$true] %s29_s20 }
   0x8   :  { %35 = dma.hbm_to_vmem [thread:$0]  %s28_s16, 512, %s30_s20, [#allocation6], %s193_s17, %s193_s17, %s194_s18  }
   0x9   :  { %186 = dma.done.wait [#allocation3], 256  }
   0xa   :  { %187 = vsyncadd [#allocation3], 4294967040 }
   0xb   :  { %188 = dma.done.wait [#allocation6], 512  }
   0xc   :  { %189 = vsyncadd [#allocation6], 4294966784  ;;  %v49_v0 = vld [vmem:[#allocation5 + $0x18] sm:$0xff]  ;;  %v48_v1 = vld [vmem:[#allocation5 + $0x10] sm:$0xff]  ;;  %vm50_vm0 = vcmask 261120   ;;  %s196_s0 = smov [#allocation7]  }
   0xd   :  { %69 = vmatpush.msra.mxu0 %v49_v0  ;;  %105 = vmatpush.msra.mxu1 %v49_v0  ;;  %v47_v2 = vld [vmem:[#allocation5 + $0x8] sm:$0xff]  ;;  %v46_v3 = vld [vmem:[#allocation5] sm:$0xff]  ;;  %v44_v4 = vld [vmem:[#allocation2] sm:$0xff]  ;;  %s87_s1 = sshll.u32 %s196_s0, 4  ;;  %s89_s23 = sshll.u32 %s232_s2, 4  ;;  %vm80_vm1 = vcmask 785408   ;;  %s88_s1 = int_to_ptr.vmem [resolvable:$true] %s87_s1  ;;  %s90_s23 = int_to_ptr.hbm [resolvable:$true] %s89_s23 }
   0xe   :  { %v45_v5 = vld [vmem:[#allocation2 + $0x8] sm:$0xff] }
   0xf   :  { %70 = vmatpush.msra.mxu0 %v48_v1  ;;  %106 = vmatpush.msra.mxu1 %v48_v1 }
  0x11   :  { %71 = vmatpush.msra.mxu0 %v47_v2  ;;  %107 = vmatpush.msra.mxu1 %v47_v2 }
  0x13   :  { %72 = vmatpush.msra.mxu0 %v46_v3  ;;  %108 = vmatpush.msra.mxu1 %v46_v3 }
  0x14   :  { %103 = vmatmul.msk.f32.vlgmr.msra.gmra.mxu0 %vm50_vm0, %v44_v4  ;;  %104 = vmatmul.msk.f32.vlgmr.msra.gmra.mxu1 %vm50_vm0, %v45_v5 }
  0x91   :  { %v74_v6 = vpop.f32.mrf.mxu0  ;;  %v77_v7 = vpop.f32.mrf.mxu1 }
  0x92   :  { %81 = vst.msk [vmem:[#allocation7] sm:$0xff] %vm80_vm1, %v74_v6 }
  0x93   :  { %82 = vst.msk [vmem:[#allocation7 + $0x8] sm:$0xff] %vm80_vm1, %v77_v7 }
  0x94   :  { %95 = dma.vmem_to_hbm [thread:$0]  %s88_s1, 256, %s90_s23, [#allocation4], %s193_s17, %s193_s17, %s194_s18  }
  0x95   :  { %190 = dma.done.wait [#allocation4], 256  }
  0x96   :  { %191 = vsyncadd [#allocation4], 4294967040 }
  0x97   :  { %100 = vsyncpa [#allocation3], 1 }
  0x98   :  { %101 = vsyncpa [#allocation6], 1 }
  0x99   :  { %102 = vsyncpa [#allocation4], 1 }

</bundles_post_ra>
